<compile_context>
chip_gen: v6e
topology: v6e:2x2x1
jax: 0.10.0
libtpu: 0.0.40
codegen_flags: <defaults>
</compile_context>

<pallas_src>
import jax
import jax.numpy as jnp
from jax.experimental import pallas as pl
from jax.experimental.pallas import tpu as pltpu


def _sigmoid_kernel(x_ref, o_ref):
    x = x_ref[...]
    # f32 intermediate for accuracy (no-op when input is already f32).
    xf = x.astype(jnp.float32)
    # Kernel is HBM-bound: exact exp + exact reciprocal are fully hidden
    # behind the DMA, so keep them for bit-tight agreement with the reference.
    y = pl.reciprocal(1.0 + jnp.exp(-xf))
    o_ref[...] = y.astype(o_ref.dtype)


_LANES = 128
_MAX_LANE_WIDTH = 1024
_TARGET_BLOCK_BYTES = 4 * 1024 * 1024   # ~4 MiB per buffer (review item #1)
_VMEM_LIMIT_BYTES = 32 * 1024 * 1024    # safe on v5e/v6e/v7x (review items #1-#3)


def sigmoid_pallas(x: jax.Array) -> jax.Array:
    """Elementwise sigmoid via a Pallas TPU kernel (matches torch.sigmoid)."""
    orig_shape = x.shape
    orig_dtype = x.dtype
    n = x.size

    if n == 0:
        # Nothing to compute; a zero-size grid pallas_call is not useful.
        return x

    itemsize = jnp.dtype(orig_dtype).itemsize
    # Dtype-aware sublane granularity: 8 rows f32, 16 bf16, 32 int8/fp8.
    sub = max(8, 32 // max(1, itemsize))

    # --- Lane-dense layout (pad if needed so every size takes the fast path) ---
    flat = x.reshape(-1)
    n_pad = -(-n // _LANES) * _LANES          # round up to a multiple of 128
    if n_pad != n:
        flat = jnp.pad(flat, (0, n_pad - n))  # pad values are sliced off below

    cols = _LANES
    while cols < _MAX_LANE_WIDTH and n_pad % (cols * 2) == 0:
        cols *= 2
    rows = n_pad // cols
    x2 = flat.reshape(rows, cols)

    # --- Row tiling: ~4 MiB per buffer, dtype-aware sublane multiple ---
    tr = _TARGET_BLOCK_BYTES // max(1, cols * itemsize)
    tr = max(sub, (tr // sub) * sub)
    if tr >= rows:
        if rows >= 2 * sub:
            # Whole slab fits one block: split into >= 2 blocks anyway so the
            # "parallel" grid axis can shard across v7x's two TensorCores.
            half = -(-rows // 2)
            tr = -(-half // sub) * sub
        else:
            tr = rows  # full-extent block (always a legal block shape)
    grid = (pl.cdiv(rows, tr),)  # elementwise op tolerates a partial tail block

    out = pl.pallas_call(
        _sigmoid_kernel,
        out_shape=jax.ShapeDtypeStruct((rows, cols), orig_dtype),
        grid=grid,
        in_specs=[pl.BlockSpec((tr, cols), lambda i: (i, 0))],
        out_specs=pl.BlockSpec((tr, cols), lambda i: (i, 0)),
        compiler_params=pltpu.CompilerParams(
            dimension_semantics=("parallel",),
            vmem_limit_bytes=_VMEM_LIMIT_BYTES,
        ),
    )(x2)

    out_flat = out.reshape(-1)
    if n_pad != n:
        out_flat = out_flat[:n]
    return out_flat.reshape(orig_shape)


class Sigmoid:
    """Mirrors the PyTorch Sigmoid Module's forward() using the Pallas kernel."""

    def __init__(self):
        self.act = sigmoid_pallas
        self.input = None
        self.output = None

    def forward(self, x):
        self.input = x
        self.output = self.act(x)
        return self.output
    # TODO(synk): backward()/d_sigmoid is not part of the forward pass and is
    # not implemented as a Pallas kernel here.


if __name__ == "__main__":
    key = jax.random.PRNGKey(0)

    # Small NCHW activation tensor consistent with the module.
    x = jax.random.normal(key, (2, 4, 16, 16), dtype=jnp.float32)
    mod = Sigmoid()
    y = mod.forward(x)
    jax.block_until_ready(y)

    ref = jax.nn.sigmoid(x)
    assert y.shape == x.shape and y.dtype == x.dtype
    assert jnp.max(jnp.abs(y - ref)) < 1e-6

    # Also exercise the padded (non-128-divisible) path.
    x_odd = jax.random.normal(jax.random.PRNGKey(1), (3, 5, 7), dtype=jnp.float32)
    y_odd = sigmoid_pallas(x_odd)
    jax.block_until_ready(y_odd)
    assert y_odd.shape == x_odd.shape
    assert jnp.max(jnp.abs(y_odd - jax.nn.sigmoid(x_odd))) < 1e-6

    print("KERNEL_OK")
</pallas_src>

<mosaic_0001>
module attributes {stable_mosaic.version = 11 : i64} {
  func.func @_sigmoid_kernel(%arg0: i32, %arg1: memref<2x1024xf32, #tpu.memory_space<vmem>>, %arg2: memref<2x1024xf32, #tpu.memory_space<vmem>>) attributes {dimension_semantics = [#tpu.dimension_semantics<parallel>], iteration_bounds = array<i64: 1>, scalar_prefetch = 0 : i64, scratch_operands = 0 : i64, tpu.core_type = #tpu.core_type<tc>, window_params = [{transform_indices = @transform_0, window_bounds = array<i64: 2, 1024>}, {transform_indices = @transform_1, window_bounds = array<i64: 2, 1024>}]} {
    %c0 = arith.constant 0 : index
    %c0_0 = arith.constant 0 : index
    %0 = vector.load %arg1[%c0, %c0_0] : memref<2x1024xf32, #tpu.memory_space<vmem>>, vector<2x1024xf32>
    %cst = arith.constant 0.000000e+00 : f32
    %1 = vector.broadcast %cst : f32 to vector<2x1024xf32>
    %2 = arith.subf %1, %0 : vector<2x1024xf32>
    %3 = math.exp %2 : vector<2x1024xf32>
    %cst_1 = arith.constant 1.000000e+00 : f32
    %4 = vector.broadcast %cst_1 : f32 to vector<2x1024xf32>
    %5 = arith.addf %4, %3 : vector<2x1024xf32>
    %6 = tpu.reciprocal %5 : vector<2x1024xf32> -> vector<2x1024xf32>
    %c0_2 = arith.constant 0 : index
    %c0_3 = arith.constant 0 : index
    %7 = vector.load %arg2[%c0_2, %c0_3] : memref<2x1024xf32, #tpu.memory_space<vmem>>, vector<2x1024xf32>
    tpu.vector_store %arg2[%c0_2, %c0_3], %6 {strides = array<i32>} : memref<2x1024xf32, #tpu.memory_space<vmem>>, vector<2x1024xf32>,
    return
  }
  func.func @transform_0(%arg0: i32) -> (i32, i32) {
    %c0_i32 = arith.constant 0 : i32
    %c0_i32_0 = arith.constant 0 : i32
    return %arg0, %c0_i32 : i32, i32
  }
  func.func @transform_1(%arg0: i32) -> (i32, i32) {
    %c0_i32 = arith.constant 0 : i32
    %c0_i32_0 = arith.constant 0 : i32
    return %arg0, %c0_i32 : i32, i32
  }
}

</mosaic_0001>

<bundles_post_ra>
// kernel: tpu_custom_call.1
= control target key start
LH: loop header
LB: loop body
LE: loop exit
PB: predicated region body
PF: predicated region fallthrough
CT: control target
= control target key end

     0   :  { %6 = vsyncpa [#allocation3], 0  ;;  %s122_s0 = inlined_call_operand.hbm [shape: f32[2,1024], index: 0, kind: input, shape index: {}]   ;;  %s123_s1 = inlined_call_operand.hbm [shape: f32[2,1024], index: 1, kind: output, shape index: {}]  }
   0x1   :  { %7 = vsyncpa [#allocation4], 0  ;;  %s104_s6 = smov [#allocation2]  }
   0x2   :  { %s14_s7 = sshll.u32 %s104_s6, 4  ;;  %s15_s7 = int_to_ptr.vmem [resolvable:$true] %s14_s7 }
   0x3   :  { %s68_s8 = scalar_lea.vmem %s15_s7, 256  ;;  %p73_p1 = scmp.lt.s32.totalorder %s15_s7, %s15_s7 }
   0x4   :  { %p69_p0 = scmp.ne.s32.totalorder %s15_s7, %s68_s8  ;;  %p74_p2 = scmp.lt.s32.totalorder %s68_s8, %s68_s8 }
   0x6   :  { %p75_p3 = por %p74_p2, %p73_p1 }
   0x8   :  { %p76_p4 = pnand %p75_p3, %p69_p0 }
   0xa   :  { %79 = shalt.err (!%p76_p4)
}
   0xb   :  { %17 = dma.hbm_to_vmem [thread:$0]  %s122_s0, 256, %s15_s7, [#allocation3]  }
   0xc   :  { %100 = dma.done.wait [#allocation3], 256  }
   0xd   :  { %101 = vsyncadd [#allocation3], 4294967040  ;;  %v21_v0 = vld [vmem:[#allocation2] sm:$0xff]  ;;  %v22_v1 = vld [vmem:[#allocation2 + $0x8] sm:$0xff]  ;;  %s105_s11 = smov [#allocation5]  }
   0xe   :  { %v23_v2 = vsub.f32 0.0, %v21_v0  ;;  %v24_v3 = vsub.f32 0.0, %v22_v1  ;;  %s41_s12 = sshll.u32 %s105_s11, 4  ;;  %s42_s12 = int_to_ptr.vmem [resolvable:$true] %s41_s12 }
   0xf   :  { %s80_s0 = scalar_lea.vmem %s42_s12, 256  ;;  %p85_p6 = scmp.lt.s32.totalorder %s42_s12, %s42_s12 }
  0x10   :  { %v25_v4 = vmul.f32 1.442695, %v23_v2  ;;  %v27_v5 = vmul.f32 1.442695, %v24_v3  ;;  %p81_p5 = scmp.ne.s32.totalorder %s42_s12, %s80_s0  ;;  %p86_p7 = scmp.lt.s32.totalorder %s80_s0, %s80_s0 }
  0x12   :  { %52 = vpow2.f32 %v25_v4  ;;  %p87_p8 = por %p86_p7, %p85_p6 }
  0x13   :  { %54 = vpow2.f32 %v27_v5 }
  0x14   :  { %p88_p9 = pnand %p87_p8, %p81_p5 }
  0x1f   :  { %v53_v6 = vpop.eup %52 }
  0x20   :  { %v55_v7 = vpop.eup %54  ;;  %v29_v8 = vadd.f32 1.0, %v53_v6 }
  0x21   :  { %v30_v9 = vadd.f32 1.0, %v55_v7 }
  0x22   :  { %56 = vrcp.f32 %v29_v8 }
  0x23   :  { %58 = vrcp.f32 %v30_v9 }
  0x2f   :  { %v57_v10 = vpop.eup %56 }
  0x30   :  { %v59_v11 = vpop.eup %58  ;;  %33 = vst [vmem:[#allocation5] sm:$0xff] %v57_v10 }
  0x31   :  { %34 = vst [vmem:[#allocation5 + $0x8] sm:$0xff] %v59_v11 }
  0x32   :  { %91 = shalt.err (!%p88_p9)
}
  0x33   :  { %44 = dma.vmem_to_hbm [thread:$0]  %s42_s12, 256, %s123_s1, [#allocation4]  }
  0x34   :  { %102 = dma.done.wait [#allocation4], 256  }
  0x35   :  { %103 = vsyncadd [#allocation4], 4294967040 }
  0x36   :  { %48 = vsyncpa [#allocation3], 1 }
  0x37   :  { %49 = vsyncpa [#allocation4], 1 }

</bundles_post_ra>
